<compile_context>
chip_gen: v6e
topology: v6e:2x2x1
jax: 0.10.0
libtpu: 0.0.40
codegen_flags: <defaults>
</compile_context>

<pallas_src>
import functools
import math

import jax
import jax.numpy as jnp
from jax import lax
from jax.experimental import pallas as pl
from jax.experimental.pallas import tpu as pltpu

_MASK_VALUE = -1e30        # finite large-negative: avoids inf-inf -> NaN inside the kernel.
                           # NOTE: for rows that are *fully* masked by an arbitrary mask the
                           # reference produces NaN (softmax of all -inf) while this kernel
                           # produces a uniform average of V; causal masks never hit this.
_VMEM_LIMIT = 32 * 1024 * 1024


def _pick_tile(dim, pref, align):
    """Largest tile <= pref that divides dim and is `align`-aligned; else the full dim."""
    if dim <= pref:
        return dim
    t = (pref // align) * align
    while t >= align:
        if dim % t == 0:
            return t
        t -= align
    return dim


# ---------------------------------------------------------------------------
# Projection kernel: x (B, S, D) @ w_t (D, G*dh) -> out (G, B, S, dh)
# Head-major output; the per-head split happens once in the epilogue (not per kv step).
# ---------------------------------------------------------------------------
def _proj_heads_kernel(x_ref, w_ref, o_ref, acc_ref, *, n_groups, d_head):
    kd = pl.program_id(2)

    @pl.when(kd == 0)
    def _init():
        acc_ref[...] = jnp.zeros_like(acc_ref)

    # Cast activations to the weight dtype (bf16 in the fast path) -> MXU at bf16 rate,
    # accumulate in f32.
    acc_ref[...] += jnp.dot(x_ref[0].astype(w_ref.dtype), w_ref[...],
                            preferred_element_type=jnp.float32)

    @pl.when(kd == pl.num_programs(2) - 1)
    def _store():
        for g in range(n_groups):   # epilogue-only head split (once per output tile)
            o_ref[g, 0] = acc_ref[:, g * d_head:(g + 1) * d_head].astype(o_ref.dtype)


def proj_heads(x, w_t, n_groups, d_head, *, out_dtype=None, tm=256, tkd=512):
    """x: (B, S, D), w_t: (D, n_groups*d_head) -> (n_groups, B, S, d_head)."""
    B, S, D = x.shape
    d_out = n_groups * d_head
    assert w_t.shape == (D, d_out)
    out_dtype = out_dtype or x.dtype
    tm = _pick_tile(S, tm, 8)
    tkd = _pick_tile(D, tkd, 128)

    kernel = functools.partial(_proj_heads_kernel, n_groups=n_groups, d_head=d_head)
    flops = 2 * B * S * D * d_out
    bytes_accessed = (int(x.size) * x.dtype.itemsize
                      + int(w_t.size) * w_t.dtype.itemsize
                      + B * S * d_out * jnp.dtype(out_dtype).itemsize)
    return pl.pallas_call(
        kernel,
        out_shape=jax.ShapeDtypeStruct((n_groups, B, S, d_head), out_dtype),
        grid=(B, S // tm, D // tkd),
        in_specs=[
            pl.BlockSpec((1, tm, tkd), lambda b, si, kd: (b, si, kd)),
            pl.BlockSpec((tkd, d_out), lambda b, si, kd: (kd, 0)),
        ],
        out_specs=pl.BlockSpec((n_groups, 1, tm, d_head),
                               lambda b, si, kd: (0, b, si, 0)),
        scratch_shapes=[pltpu.VMEM((tm, d_out), jnp.float32)],
        compiler_params=pltpu.CompilerParams(
            dimension_semantics=("parallel", "parallel", "arbitrary"),
            vmem_limit_bytes=_VMEM_LIMIT),
        cost_estimate=pl.CostEstimate(flops=flops, transcendentals=0,
                                      bytes_accessed=bytes_accessed),
    )(x, w_t)


# ---------------------------------------------------------------------------
# Flash attention with heads on the grid and the output projection fused per head.
#   q/k/v: (G, B, S, d_head) head-major;  wo_heads: (H, d_head, D)
# ---------------------------------------------------------------------------
def _flash_kernel(*refs, n_heads, mxu_dtype, has_mask, mask_3d, causal,
                  tq, tk, approx_recip):
    if has_mask:
        (q_ref, k_ref, v_ref, wo_ref, mask_ref,
         o_ref, m_ref, l_ref, acc_ref, oacc_ref) = refs
    else:
        (q_ref, k_ref, v_ref, wo_ref,
         o_ref, m_ref, l_ref, acc_ref, oacc_ref) = refs
        mask_ref = None

    qi = pl.program_id(1)
    h = pl.program_id(2)
    ki = pl.program_id(3)
    nk = pl.num_programs(3)

    @pl.when((h == 0) & (ki == 0))
    def _init_out():
        oacc_ref[...] = jnp.zeros_like(oacc_ref)

    @pl.when(ki == 0)
    def _init_head():
        m_ref[...] = jnp.full(m_ref.shape, -jnp.inf, m_ref.dtype)
        l_ref[...] = jnp.zeros_like(l_ref)
        acc_ref[...] = jnp.zeros_like(acc_ref)

    def _update():
        q = q_ref[0, 0].astype(mxu_dtype)            # (tq, dh)
        k = k_ref[0, 0].astype(mxu_dtype)            # (tk, dh)
        # QK^T contracting the last axes (no k.T relayout); f32 MXU accumulation.
        s = lax.dot_general(q, k, (((1,), (1,)), ((), ())),
                            preferred_element_type=jnp.float32)   # (tq, tk) f32
        if has_mask:
            mask_tile = mask_ref[0] if mask_3d else mask_ref[...]
            s = jnp.where(mask_tile != 0, _MASK_VALUE, s)
        elif causal:
            rows = qi * tq + lax.broadcasted_iota(jnp.int32, (tq, tk), 0)
            cols = ki * tk + lax.broadcasted_iota(jnp.int32, (tq, tk), 1)
            s = jnp.where(cols > rows, _MASK_VALUE, s)

        # Softmax statistics stay in f32.
        m_prev = m_ref[...]
        m_new = jnp.maximum(m_prev, jnp.max(s, axis=-1, keepdims=True))
        alpha = jnp.exp(m_prev - m_new)
        p = jnp.exp(s - m_new)
        l_ref[...] = alpha * l_ref[...] + jnp.sum(p, axis=-1, keepdims=True)
        acc_ref[...] = alpha * acc_ref[...] + lax.dot_general(
            p.astype(mxu_dtype), v_ref[0, 0].astype(mxu_dtype),
            (((1,), (0,)), ((), ())), preferred_element_type=jnp.float32)
        m_ref[...] = m_new

    if causal:
        # Skip compute on kv tiles that lie entirely above the diagonal.
        # TODO(synk): also skip their DMA via a PrefetchScalarGridSpec per-qi kv extent.
        @pl.when(ki * tk <= qi * tq + (tq - 1))
        def _maybe_update():
            _update()
    else:
        _update()

    @pl.when(ki == nk - 1)
    def _fold_head():
        # Fused per-head output projection: no (tq, D) concat; divide via EUP reciprocal.
        if approx_recip:
            inv_l = pl.reciprocal(l_ref[...], approx=True)
        else:
            inv_l = 1.0 / l_ref[...]
        attn = (acc_ref[...] * inv_l).astype(mxu_dtype)            # (tq, dh)
        oacc_ref[...] += jnp.dot(attn, wo_ref[0],
                                 preferred_element_type=jnp.float32)

    @pl.when((ki == nk - 1) & (h == n_heads - 1))
    def _store():
        o_ref[0] = oacc_ref[...].astype(o_ref.dtype)


def flash_mha(q_heads, k_heads, v_heads, wo_heads, n_heads, *,
              q_off=0, k_off=0, v_off=0, out_dtype,
              mask=None, causal=False, tq=256, tk=256):
    _, B, Sq, dh = q_heads.shape
    _, _, Sk, _ = k_heads.shape
    D = n_heads * dh
    tq = _pick_tile(Sq, tq, 8)
    tk = _pick_tile(Sk, tk, 128)
    nq, nk = Sq // tq, Sk // tk

    mxu_dtype = q_heads.dtype                 # bf16 in the fast path, f32 otherwise
    approx_recip = (mxu_dtype == jnp.bfloat16)
    has_mask = (mask is not None) and (not causal)
    mask_3d = False

    in_specs = [
        pl.BlockSpec((1, 1, tq, dh), lambda b, qi, h, ki: (q_off + h, b, qi, 0)),
        pl.BlockSpec((1, 1, tk, dh), lambda b, qi, h, ki: (k_off + h, b, ki, 0)),
        pl.BlockSpec((1, 1, tk, dh), lambda b, qi, h, ki: (v_off + h, b, ki, 0)),
        pl.BlockSpec((1, dh, D), lambda b, qi, h, ki: (h, 0, 0)),
    ]
    args = [q_heads, k_heads, v_heads, wo_heads]
    if has_mask:
        m = mask
        if m.ndim == 3 and m.shape[0] == 1:
            m = m[0]
        if m.ndim == 2:       # batch-independent mask: (Sq, Sk), HBM traffic / B
            in_specs.append(pl.BlockSpec((tq, tk), lambda b, qi, h, ki: (qi, ki)))
        else:                 # per-batch mask: (B, Sq, Sk)
            mask_3d = True
            in_specs.append(pl.BlockSpec((1, tq, tk), lambda b, qi, h, ki: (b, qi, ki)))
        # int8 mask (4x less HBM than f32); pass an int8/bool mask to avoid this cast.
        args.append(m.astype(jnp.int8))

    kernel = functools.partial(
        _flash_kernel, n_heads=n_heads, mxu_dtype=mxu_dtype, has_mask=has_mask,
        mask_3d=mask_3d, causal=causal, tq=tq, tk=tk, approx_recip=approx_recip)

    flops = 4 * B * n_heads * Sq * Sk * dh + 2 * B * Sq * D * D
    bytes_accessed = (sum(int(a.size) * a.dtype.itemsize for a in args)
                      + B * Sq * D * jnp.dtype(out_dtype).itemsize)

    return pl.pallas_call(
        kernel,
        out_shape=jax.ShapeDtypeStruct((B, Sq, D), out_dtype),
        grid=(B, nq, n_heads, nk),
        in_specs=in_specs,
        out_specs=pl.BlockSpec((1, tq, D), lambda b, qi, h, ki: (b, qi, 0)),
        scratch_shapes=[
            pltpu.VMEM((tq, 1), jnp.float32),    # running max
            pltpu.VMEM((tq, 1), jnp.float32),    # running sum
            pltpu.VMEM((tq, dh), jnp.float32),   # per-head numerator accumulator
            pltpu.VMEM((tq, D), jnp.float32),    # fused output-projection accumulator
        ],
        compiler_params=pltpu.CompilerParams(
            dimension_semantics=("parallel", "parallel", "arbitrary", "arbitrary"),
            vmem_limit_bytes=_VMEM_LIMIT),
        cost_estimate=pl.CostEstimate(flops=flops,
                                      transcendentals=B * n_heads * Sq * Sk,
                                      bytes_accessed=bytes_accessed),
    )(*args)


# ---------------------------------------------------------------------------
# Full MultiHeadAttention forward.
# ---------------------------------------------------------------------------
def multi_head_attention(query_input, kv_input, params, n_heads,
                         subsequent_mask=None, *, causal=False, use_bf16=True):
    wq, wk, wv, wo = params                 # PyTorch nn.Linear weights (out, in)
    B, Sq, D = query_input.shape
    _, Sk, _ = kv_input.shape
    if D % n_heads != 0:
        raise ValueError(f"Model dimension {D} not divisible by {n_heads} heads")
    dh = D // n_heads
    scale = 1.0 / math.sqrt(dh)

    w_dtype = jnp.bfloat16 if use_bf16 else query_input.dtype
    qkv_dtype = w_dtype                      # q/k/v intermediates stored in MXU dtype

    # NOTE: precompute these transposed/scaled/grouped weights once at model-load
    # time in a real deployment (they are re-materialized per call here).
    wq_t = (wq.T * scale).astype(w_dtype)    # 1/sqrt(d_attention) folded into Q weights
    wo_heads = wo.T.reshape(n_heads, dh, D).astype(w_dtype)

    if kv_input is query_input:
        # Self-attention: single fused QKV projection -> activation read from HBM once.
        w_qkv = jnp.concatenate(
            [wq_t, wk.T.astype(w_dtype), wv.T.astype(w_dtype)], axis=1)   # (D, 3D)
        qkv = proj_heads(query_input, w_qkv, 3 * n_heads, dh, out_dtype=qkv_dtype)
        q_arr = k_arr = v_arr = qkv
        q_off, k_off, v_off = 0, n_heads, 2 * n_heads
    else:
        q_arr = proj_heads(query_input, wq_t, n_heads, dh, out_dtype=qkv_dtype)
        w_kv = jnp.concatenate(
            [wk.T.astype(w_dtype), wv.T.astype(w_dtype)], axis=1)         # (D, 2D)
        kv = proj_heads(kv_input, w_kv, 2 * n_heads, dh, out_dtype=qkv_dtype)
        k_arr = v_arr = kv
        q_off, k_off, v_off = 0, 0, n_heads

    return flash_mha(q_arr, k_arr, v_arr, wo_heads, n_heads,
                     q_off=q_off, k_off=k_off, v_off=v_off,
                     out_dtype=query_input.dtype,
                     mask=subsequent_mask, causal=causal)


# ---------------------------------------------------------------------------
# Pure-JAX reference (sanity check).
# ---------------------------------------------------------------------------
def reference_mha(query_input, kv_input, params, n_heads, mask=None):
    wq, wk, wv, wo = params
    B, Sq, D = query_input.shape
    _, Sk, _ = kv_input.shape
    dh = D // n_heads
    q = (query_input @ wq.T).reshape(B, Sq, n_heads, dh).transpose(0, 2, 1, 3)
    k = (kv_input @ wk.T).reshape(B, Sk, n_heads, dh).transpose(0, 2, 1, 3)
    v = (kv_input @ wv.T).reshape(B, Sk, n_heads, dh).transpose(0, 2, 1, 3)
    s = jnp.einsum("bhqd,bhkd->bhqk", q, k) / math.sqrt(dh)
    if mask is not None:
        m = jnp.broadcast_to(mask, (B, Sq, Sk))
        s = jnp.where(m[:, None, :, :], -jnp.inf, s)
    p = jax.nn.softmax(s, axis=-1)
    x = jnp.einsum("bhqk,bhkd->bhqd", p, v)
    x = x.transpose(0, 2, 1, 3).reshape(B, Sq, D)
    return x @ wo.T


if __name__ == "__main__":
    d_model, n_heads = 32, 4
    B, Sq, Sk = 2, 8, 8

    key = jax.random.PRNGKey(0)
    k_q, k_kv, k_wq, k_wk, k_wv, k_wo = jax.random.split(key, 6)

    bound = 1.0 / math.sqrt(d_model)
    wq = jax.random.uniform(k_wq, (d_model, d_model), jnp.float32, -bound, bound)
    wk = jax.random.uniform(k_wk, (d_model, d_model), jnp.float32, -bound, bound)
    wv = jax.random.uniform(k_wv, (d_model, d_model), jnp.float32, -bound, bound)
    wo = jax.random.uniform(k_wo, (d_model, d_model), jnp.float32, -bound, bound)
    params = (wq, wk, wv, wo)

    query_input = jax.random.normal(k_q, (B, Sq, d_model), jnp.float32)
    kv_input = jax.random.normal(k_kv, (B, Sk, d_model), jnp.float32)

    causal_mask_2d = jnp.triu(jnp.ones((Sq, Sk), jnp.bool_), k=1)     # True == masked out
    causal_mask_3d = jnp.broadcast_to(causal_mask_2d, (B, Sq, Sk))

    ref_causal = reference_mha(query_input, kv_input, params, n_heads, causal_mask_3d)
    ref_nomask = reference_mha(query_input, kv_input, params, n_heads, None)
    ref_self = reference_mha(query_input, query_input, params, n_heads, causal_mask_3d)

    # 1) Cross-attention, explicit 2D mask, full-f32 path (tight tolerance).
    out = jax.block_until_ready(
        multi_head_attention(query_input, kv_input, params, n_heads,
                             causal_mask_2d, use_bf16=False))
    assert out.shape == (B, Sq, d_model)
    assert jnp.allclose(out, ref_causal, atol=2e-4, rtol=2e-4), "f32 masked mismatch"

    # 2) Cross-attention, in-kernel causal mask (no mask DMA), bf16 MXU operands.
    out = jax.block_until_ready(
        multi_head_attention(query_input, kv_input, params, n_heads, causal=True))
    assert jnp.allclose(out, ref_causal, atol=5e-2, rtol=5e-2), "bf16 causal mismatch"

    # 3) Cross-attention, no mask, bf16 MXU operands.
    out = jax.block_until_ready(
        multi_head_attention(query_input, kv_input, params, n_heads, None))
    assert jnp.allclose(out, ref_nomask, atol=5e-2, rtol=5e-2), "bf16 unmasked mismatch"

    # 4) Self-attention (fused QKV projection), per-batch 3D mask, full-f32 path.
    out = jax.block_until_ready(
        multi_head_attention(query_input, query_input, params, n_heads,
                             causal_mask_3d, use_bf16=False))
    assert jnp.allclose(out, ref_self, atol=2e-4, rtol=2e-4), "f32 self-attn mismatch"

    print("KERNEL_OK")
</pallas_src>

<mosaic_0001>
module attributes {stable_mosaic.version = 11 : i64} {
  func.func @_proj_heads_kernel(%arg0: i32, %arg1: i32, %arg2: i32, %arg3: memref<1x8x32xf32, #tpu.memory_space<vmem>>, %arg4: memref<32x32xf32, #tpu.memory_space<vmem>>, %arg5: memref<4x1x8x8xf32, #tpu.memory_space<vmem>>, %arg6: memref<8x32xf32, #tpu.memory_space<vmem>>) attributes {dimension_semantics = [#tpu.dimension_semantics<parallel>, #tpu.dimension_semantics<parallel>, #tpu.dimension_semantics<arbitrary>], iteration_bounds = array<i64: 2, 1, 1>, scalar_prefetch = 0 : i64, scratch_operands = 1 : i64, tpu.core_type = #tpu.core_type<tc>, window_params = [{transform_indices = @transform_0, window_bounds = array<i64: 1, 8, 32>}, {transform_indices = @transform_1, window_bounds = array<i64: 32, 32>}, {transform_indices = @transform_2, window_bounds = array<i64: 4, 1, 8, 8>}]} {
    %c0_i32 = arith.constant 0 : i32
    %0 = arith.cmpi eq, %arg2, %c0_i32 : i32
    %1 = arith.extui %0 : i1 to i32
    %c0_i32_0 = arith.constant 0 : i32
    %2 = arith.cmpi ne, %1, %c0_i32_0 : i32
    scf.if %2 {
      %cst_11 = arith.constant 0.000000e+00 : f32
      %13 = vector.broadcast %cst_11 : f32 to vector<8x32xf32>
      %c0_12 = arith.constant 0 : index
      %c0_13 = arith.constant 0 : index
      %14 = vector.load %arg6[%c0_12, %c0_13] : memref<8x32xf32, #tpu.memory_space<vmem>>, vector<8x32xf32>
      tpu.vector_store %arg6[%c0_12, %c0_13], %13 {strides = array<i32>} : memref<8x32xf32, #tpu.memory_space<vmem>>, vector<8x32xf32>,
    } else {
    }
    %c0 = arith.constant 0 : index
    %c0_1 = arith.constant 0 : index
    %3 = vector.load %arg6[%c0, %c0_1] : memref<8x32xf32, #tpu.memory_space<vmem>>, vector<8x32xf32>
    %c0_2 = arith.constant 0 : index
    %c0_3 = arith.constant 0 : index
    %c0_4 = arith.constant 0 : index
    %4 = vector.load %arg3[%c0_2, %c0_3, %c0_4] : memref<1x8x32xf32, #tpu.memory_space<vmem>>, vector<1x8x32xf32>
    %5 = vector.shape_cast %4 : vector<1x8x32xf32> to vector<8x32xf32>
    %c0_5 = arith.constant 0 : index
    %c0_6 = arith.constant 0 : index
    %6 = vector.load %arg4[%c0_5, %c0_6] : memref<32x32xf32, #tpu.memory_space<vmem>>, vector<32x32xf32>
    %cst = arith.constant dense<0.000000e+00> : vector<8x32xf32>
    %7 = tpu.matmul %5, %6, %cst {dimension_numbers = #tpu.dot_dimension_numbers<[1], [0], [0], [1], [0, 0, 1, 1], [], []>} : vector<8x32xf32>, vector<32x32xf32>, vector<8x32xf32> -> vector<8x32xf32>
    %8 = arith.addf %3, %7 : vector<8x32xf32>
    %c0_7 = arith.constant 0 : index
    %c0_8 = arith.constant 0 : index
    %9 = vector.load %arg6[%c0_7, %c0_8] : memref<8x32xf32, #tpu.memory_space<vmem>>, vector<8x32xf32>
    tpu.vector_store %arg6[%c0_7, %c0_8], %8 {strides = array<i32>} : memref<8x32xf32, #tpu.memory_space<vmem>>, vector<8x32xf32>,
    %c0_i32_9 = arith.constant 0 : i32
    %10 = arith.cmpi eq, %arg2, %c0_i32_9 : i32
    %11 = arith.extui %10 : i1 to i32
    %c0_i32_10 = arith.constant 0 : i32
    %12 = arith.cmpi ne, %11, %c0_i32_10 : i32
    scf.if %12 {
      %c0_11 = arith.constant 0 : index
      %c0_12 = arith.constant 0 : index
      %13 = vector.load %arg6[%c0_11, %c0_12] : memref<8x32xf32, #tpu.memory_space<vmem>>, vector<8x8xf32>
      %c0_13 = arith.constant 0 : index
      %c0_14 = arith.constant 0 : index
      %c0_15 = arith.constant 0 : index
      %c0_16 = arith.constant 0 : index
      %14 = vector.load %arg5[%c0_13, %c0_14, %c0_15, %c0_16] : memref<4x1x8x8xf32, #tpu.memory_space<vmem>>, vector<1x1x8x8xf32>
      %15 = vector.shape_cast %14 : vector<1x1x8x8xf32> to vector<8x8xf32>
      %16 = vector.shape_cast %13 : vector<8x8xf32> to vector<1x1x8x8xf32>
      tpu.vector_store %arg5[%c0_13, %c0_14, %c0_15, %c0_16], %16 {strides = array<i32>} : memref<4x1x8x8xf32, #tpu.memory_space<vmem>>, vector<1x1x8x8xf32>,
      %c0_17 = arith.constant 0 : index
      %c8 = arith.constant 8 : index
      %17 = vector.load %arg6[%c0_17, %c8] : memref<8x32xf32, #tpu.memory_space<vmem>>, vector<8x8xf32>
      %c1 = arith.constant 1 : index
      %c0_18 = arith.constant 0 : index
      %c0_19 = arith.constant 0 : index
      %c0_20 = arith.constant 0 : index
      %18 = vector.load %arg5[%c1, %c0_18, %c0_19, %c0_20] : memref<4x1x8x8xf32, #tpu.memory_space<vmem>>, vector<1x1x8x8xf32>
      %19 = vector.shape_cast %18 : vector<1x1x8x8xf32> to vector<8x8xf32>
      %20 = vector.shape_cast %17 : vector<8x8xf32> to vector<1x1x8x8xf32>
      tpu.vector_store %arg5[%c1, %c0_18, %c0_19, %c0_20], %20 {strides = array<i32>} : memref<4x1x8x8xf32, #tpu.memory_space<vmem>>, vector<1x1x8x8xf32>,
      %c0_21 = arith.constant 0 : index
      %c16 = arith.constant 16 : index
      %21 = vector.load %arg6[%c0_21, %c16] : memref<8x32xf32, #tpu.memory_space<vmem>>, vector<8x8xf32>
      %c2 = arith.constant 2 : index
      %c0_22 = arith.constant 0 : index
      %c0_23 = arith.constant 0 : index
      %c0_24 = arith.constant 0 : index
      %22 = vector.load %arg5[%c2, %c0_22, %c0_23, %c0_24] : memref<4x1x8x8xf32, #tpu.memory_space<vmem>>, vector<1x1x8x8xf32>
      %23 = vector.shape_cast %22 : vector<1x1x8x8xf32> to vector<8x8xf32>
      %24 = vector.shape_cast %21 : vector<8x8xf32> to vector<1x1x8x8xf32>
      tpu.vector_store %arg5[%c2, %c0_22, %c0_23, %c0_24], %24 {strides = array<i32>} : memref<4x1x8x8xf32, #tpu.memory_space<vmem>>, vector<1x1x8x8xf32>,
      %c0_25 = arith.constant 0 : index
      %c24 = arith.constant 24 : index
      %25 = vector.load %arg6[%c0_25, %c24] : memref<8x32xf32, #tpu.memory_space<vmem>>, vector<8x8xf32>
      %c3 = arith.constant 3 : index
      %c0_26 = arith.constant 0 : index
      %c0_27 = arith.constant 0 : index
      %c0_28 = arith.constant 0 : index
      %26 = vector.load %arg5[%c3, %c0_26, %c0_27, %c0_28] : memref<4x1x8x8xf32, #tpu.memory_space<vmem>>, vector<1x1x8x8xf32>
      %27 = vector.shape_cast %26 : vector<1x1x8x8xf32> to vector<8x8xf32>
      %28 = vector.shape_cast %25 : vector<8x8xf32> to vector<1x1x8x8xf32>
      tpu.vector_store %arg5[%c3, %c0_26, %c0_27, %c0_28], %28 {strides = array<i32>} : memref<4x1x8x8xf32, #tpu.memory_space<vmem>>, vector<1x1x8x8xf32>,
    } else {
    }
    return
  }
  func.func @transform_0(%arg0: i32, %arg1: i32, %arg2: i32) -> (i32, i32, i32) {
    %c0_i32 = arith.constant 0 : i32
    return %arg0, %arg1, %arg2 : i32, i32, i32
  }
  func.func @transform_1(%arg0: i32, %arg1: i32, %arg2: i32) -> (i32, i32) {
    %c0_i32 = arith.constant 0 : i32
    %c0_i32_0 = arith.constant 0 : i32
    return %arg2, %c0_i32 : i32, i32
  }
  func.func @transform_2(%arg0: i32, %arg1: i32, %arg2: i32) -> (i32, i32, i32, i32) {
    %c0_i32 = arith.constant 0 : i32
    %c0_i32_0 = arith.constant 0 : i32
    %c0_i32_1 = arith.constant 0 : i32
    return %c0_i32, %arg0, %arg1, %c0_i32_0 : i32, i32, i32, i32
  }
}

</mosaic_0001>

<bundles_post_ra>
// kernel: tpu_custom_call.1
= control target key start
LH: loop header
LB: loop body
LE: loop exit
PB: predicated region body
PF: predicated region fallthrough
CT: control target
= control target key end

     0   :  { %7 = vsyncpa [#allocation4], 0  ;;  %s913_s0 = inlined_call_operand.hbm [shape: f32[2,8,32], index: 0, kind: input, shape index: {}]   ;;  %s914_s1 = inlined_call_operand.hbm [shape: f32[32,32], index: 1, kind: input, shape index: {}]   ;;  %s915_s2 = inlined_call_operand.hbm [shape: f32[4,2,8,8], index: 2, kind: output, shape index: {}]  }
   0x1   :  { %9 = vsyncpa [#allocation4 + $0x1], 0 }
   0x2   :  { %10 = vsyncpa [#allocation7], 0 }
   0x3   :  { %11 = vsyncpa [#allocation5], 0 }
   0x4   :  { %13 = vsyncpa [#allocation5 + $0x1], 0  ;;  %s724_s9 = smov 0   ;;  %s726_s10 = smov 0  }
   0x5   :  { %s728_s11 = smov 0   ;;  %s730_s12 = smov 0  }
   0x6   :  { %s732_s13 = smov 0   ;;  %s734_s14 = smov 0  }
   0x7 LB: > { %s438_s15 = sadd.s32 4294967295, %s694_s14   ;;  %s439_s16 = sadd.s32 4294967294, %s694_s14   ;;  %s694_s14 = sphi %s734_s14, %s19_s14   ;;  %s690_s13 = sphi %s732_s13, %s933_s13   ;;  %s686_s12 = sphi %s730_s12, %s932_s12   ;;  %s682_s11 = sphi %s728_s11, %s931_s11   ;;  %s678_s10 = sphi %s726_s10, %s930_s10   ;;  %s674_s9 = sphi %s724_s9, %s929_s9  }
   0x8   : > { %p62_p0 = scmp.ne.s32.totalorder %s678_s10, %s674_s9  ;;  %p758_p1 = scmp.eq.s32.totalorder %s438_s15, 0 }
   0x9   : > { %p762_p2 = scmp.eq.s32.totalorder %s438_s15, 1  ;;  %p120_p3 = scmp.eq.s32.totalorder %s439_s16, 1 }
   0xa   : > { %p768_p4 = por %p758_p1, %p62_p0  ;;  %p440_p5 = scmp.ge.s32.totalorder %s694_s14, 1 }
   0xb   : > { %p773_p6 = por %p120_p3, %p62_p0  ;;  %p127_p7 = scmp.lt.s32.totalorder %s694_s14, 3 }
   0xc   : > { %s919_s19 = scalar_select %p768_p4, 1, 0 }
   0xd   : > { %s920_s20 = scalar_select %p773_p6, 1, 0 }
   0xe   : > { %p778_p8 = pnand %p440_p5, %p127_p7  ;;  %s696_s22 = smov [#allocation6]  }
   0xf   : > { %s142_s23 = sshll.u32 %s696_s22, 4  ;;  %s38_s25 = sadd.s32 1, %s690_s13  ;;  %s143_s23 = int_to_ptr.vmem [resolvable:$true] %s142_s23 }
  0x10   : > { %p481_p9 = pneg %p778_p8  ;;  %s567_s26 = scalar_lea.vmem %s143_s23, 512 }
  0x11   : > { %p568_p13 = scmp.ne.s32.totalorder %s143_s23, %s567_s26  ;;  %p575_p5 = scmp.lt.s32.totalorder %s143_s23, %s143_s23 }
  0x12   : > { %p787_p11 = pnand %p481_p9, %p758_p1  ;;  %p576_p7 = scmp.lt.s32.totalorder %s567_s26, %s567_s26 }
  0x14   : > { %p558_p12 = pneg %p787_p11  ;;  %p577_p6 = por %p576_p7, %p575_p5 }
  0x16   : > { %p570_p0 = pnand %p568_p13, %p558_p12 }
  0x18   : > { %p571_p3 = pneg %p570_p0 }
  0x1a   : > { %p578_p4 = pnand %p577_p6, %p571_p3 }
  0x1c   : > { %581 = shalt.err (!%p578_p4)
}
  0x1d   : > { %s697_s27 = smov 128   ;;  %s698_s28 = smov 8  }
  0x1e   : > { %484 = dma.hbm_to_vmem [thread:$0]  (!%p787_p11), %s914_s1, 512, %s143_s23, [#allocation7], %s697_s27, %s697_s27, %s698_s28  }
  0x1f   : > { %p40_p6 = scmp.ge.s32.totalorder %s38_s25, 2  ;;  %s49_s3 = sadd.s32 1, %s682_s11 }
  0x20   : > { %p56_p4 = scmp.ne.s32.totalorder %s682_s11, %s678_s10  ;;  %p57_p9 = scmp.eq.s32.totalorder %s694_s14, 0 }
  0x21   : > { %s935_s25 = smov (%p40_p6, %s38_s25), 0  ;;  %p494_p0 = scmp.lt.s32.totalorder %s694_s14, 2 }
  0x22   : > { %p805_p12 = por %p57_p9, %p56_p4  ;;  %p811_p13 = por %p762_p2, %p56_p4 }
  0x23   : > { %s42_s6 = ssub.s32 %s690_s13, %s935_s25  ;;  %s156_s7 = sand.u32 1, %s682_s11  }
  0x24   : > { %p47_p11 = scmp.eq.s32.totalorder %s42_s6, 0  ;;  %s443_s8 = sshll.u32 %s156_s7, 3 }
  0x25   : > { %s444_s16 = sshll.u32 %s690_s13, 7  ;;  %s160_s26 = scalar_lea.vmem [#allocation3], %s443_s8 }
  0x26   : > { %s820_s15 = scalar_select %p47_p11, %s682_s11, %s49_s3  }
  0x27   : > { %s167_s24 = scalar_lea.hbm %s913_s0, %s444_s16  ;;  %s169_s27 = sshll.u32 %s160_s26, 4  ;;  %s170_s27 = int_to_ptr.vmem [resolvable:$true] %s169_s27 }
  0x28   : > { %p828_p2 = pnand %p494_p0, %p805_p12  ;;  %s157_s28 = scalar_lea.sflag [#allocation4], %s156_s7 }
  0x29   : > { %s595_s29 = scalar_lea.vmem %s170_s27, 128  ;;  %s699_s30 = smov [#allocation3]  }
  0x2a   : > { %p584_p3 = pneg %p828_p2  ;;  %p596_p5 = scmp.ne.s32.totalorder %s170_s27, %s595_s29 }
  0x2b   : > { %s600_s3 = sshll.u32 %s699_s30, 4  ;;  %s601_s3 = int_to_ptr.vmem [resolvable:$false] %s600_s3 }
  0x2c   : > { %p598_p7 = pnand %p596_p5, %p584_p3  ;;  %s602_s6 = scalar_lea.vmem %s601_s3, 256 }
  0x2d   : > { %p603_p4 = scmp.lt.s32.totalorder %s170_s27, %s601_s3  ;;  %p604_p9 = scmp.lt.s32.totalorder %s602_s6, %s595_s29 }
  0x2e   : > { %p599_p6 = pneg %p598_p7 }
  0x2f   : > { %p605_p11 = por %p604_p9, %p603_p4 }
  0x31   : > { %p606_p10 = pnand %p605_p11, %p599_p6 }
  0x33   : > { %609 = shalt.err (!%p606_p10)
}
  0x34   : > { %488 = dma.hbm_to_vmem [thread:$0]  (!%p828_p2), %s167_s24, 128, %s170_s27, %s157_s28  }
  0x35   : > { %178 = sbr.rel (%p778_p8) target bundleno = 407 (0x197), region = 28  ;;  %s839_s4 = sand.u32 (!%p778_p8), 1, %s678_s10  }
  0x36   : > { %s446_s7 = sshll.u32 (!%p778_p8), %s839_s4, 3  ;;  %s181_s8 = scalar_lea.sflag (!%p778_p8), [#allocation4], %s839_s4 }
  0x37   : > { %s184_s16 = scalar_lea.vmem (!%p778_p8), [#allocation3], %s446_s7  ;;  %p926_p12 = scmp.ne.s32.totalorder (!%p778_p8), %s919_s19, 0 }
  0x3a   : > { %661 = dma.done.wait (%p926_p12), %s181_s8, 128  }
  0x3b   : > { %663 = vsyncadd (%p926_p12), %s181_s8, 4294967168 }
  0x3c   : > { %665 = dma.done.wait (%p758_p1), [#allocation7], 512  }
  0x3d   : > { %667 = vsyncadd (%p758_p1), [#allocation7], 4294966784  ;;  %vm214_vm0 = vcmask 261120   ;;  %v700_v0 = vmov 0.0   ;;  %vm701_vm1 = vmmov 0   ;;  %v221_v1 = vld [vmem:[#allocation6 + $0x18] sm:$0xff] }
  0x3e   : > { %462 = vmatprep.subr.mxu0 %v700_v0  ;;  %470 = vmatprep.mubr.msk.f32.mxu0 %vm701_vm1, %v700_v0  ;;  %215 = vst.msk [vmem:[#allocation2] sm:$0xff] %vm214_vm0, %v700_v0  ;;  %v220_v2 = vld [vmem:[#allocation6 + $0x10] sm:$0xff]  ;;  %v219_v3 = vld [vmem:[#allocation6 + $0x8] sm:$0xff]  ;;  %v218_v4 = vld [vmem:[#allocation6] sm:$0xff]  ;;  %s448_s17 = sshll.u32 %s839_s4, 5  ;;  %vm302_vm2 = vcmask 64512  }
  0x3f   : > { %463 = vmatpush3.msra.mxu0 %v221_v1  ;;  %v217_v5 = vld [vmem:[%s184_s16] sm:$0xff]  ;;  %s702_s19 = smov 104   ;;  %s703_s21 = smov 120  }
  0x40   : > { %464 = vmatprep.subr.mxu0 %v700_v0  ;;  %s208_s22 = scalar_lea.vmem [#allocation8], %s448_s17  ;;  %s704_s23 = smov 112  }
  0x41   : > { %465 = vmatpush3.msra.mxu0 %v220_v2  ;;  %s339_s24 = sshll.u32 %s208_s22, 4  ;;  %s454_s26 = sshll.u32 %s686_s12, 7  ;;  %s857_s24 = int_to_ptr.vmem [resolvable:$true] %s339_s24 }
  0x42   : > { %466 = vmatprep.subr.mxu0 %v700_v0  ;;  %s864_s28 = scalar_lea.hbm %s915_s2, %s454_s26  ;;  %s326_s12 = scalar_lea.sflag [#allocation5], %s839_s4 }
  0x43   : > { %467 = vmatpush3.msra.mxu0 %v219_v3  ;;  %s610_s29 = scalar_lea.vmem %s857_s24, 512  ;;  %s705_s30 = smov [#allocation8]  }
  0x44   : > { %468 = vmatprep.subr.mxu0 %v700_v0  ;;  %p611_p1 = scmp.ne.s32.totalorder %s857_s24, %s610_s29  ;;  %s614_s3 = sshll.u32 %s705_s30, 4  ;;  %s615_s3 = int_to_ptr.vmem [resolvable:$false] %s614_s3 }
  0x45   : > { %469 = vmatpush3.msra.mxu0 %v218_v4  ;;  %v216_v6 = vld [vmem:[#allocation2] sm:$0xff]  ;;  %s616_s6 = scalar_lea.vmem %s615_s3, 1024  ;;  %p617_p0 = scmp.lt.s32.totalorder %s857_s24, %s615_s3 }
  0x46   : > { %471 = vmatmul.mubr.msk.f32.vlgmr.msra.gmra.mxu0 %vm214_vm0, %v217_v5  ;;  %p612_p8 = pnand %p611_p1, %p811_p13  ;;  %p618_p2 = scmp.lt.s32.totalorder %s616_s6, %s610_s29 }
  0x48   : > { %p613_p10 = pneg %p612_p8  ;;  %p619_p3 = por %p618_p2, %p617_p0 }
  0x4a   : > { %p620_p5 = pnand %p619_p3, %p613_p10 }
 0x106   : > { %v292_v7 = vpop.f32.mrf.mxu0 }
 0x107   : > { %v296_v8 = vadd.f32 %v292_v7, %v216_v6 }
 0x108   : > { %v472_v9 = vpop.f32.mrf.mxu0 }
 0x109   : > { %297 = vst.msk [vmem:[#allocation2] sm:$0xff] %vm214_vm0, %v296_v8 }
 0x110   : > { %v318_v10 = vld [vmem:[#allocation2] sm:$0xff] }
 0x111   : > { %320 = vrot.lane.b32.xlu1 %v318_v10, %s702_s19  ;;  %306 = vrot.lane.b32.xlu0 %v318_v10, %s703_s21  ;;  %303 = vst.msk [vmem:[%s208_s22] sm:$0xff] %vm302_vm2, %v318_v10 }
 0x115   : > { %313 = vrot.lane.b32.xlu0 %v318_v10, %s704_s23 }
 0x183   : > { %v321_v11 = vpop.permute.xlu1 %320  ;;  %v307_v12 = vpop.permute.xlu0 %306 }
 0x184   : > { %452 = vst.msk [vmem:[%s208_s22 + $0x18] sm:$0xff] %vm302_vm2, %v321_v11  ;;  %450 = vst.msk [vmem:[%s208_s22 + $0x8] sm:$0xff] %vm302_vm2, %v307_v12 }
 0x187   : > { %v314_v13 = vpop.permute.xlu0 %313 }
 0x188   : > { %451 = vst.msk [vmem:[%s208_s22 + $0x10] sm:$0xff] %vm302_vm2, %v314_v13 }
 0x189   : > { %623 = shalt.err (!%p620_p5)
}
 0x18a   : > { %s624_s7 = scalar_lea.hbm %s864_s28, 512  ;;  %s628_s17 = scalar_lea.hbm %s915_s2, 1024 }
 0x18b   : > { %p625_p7 = scmp.ne.s32.totalorder %s864_s28, %s624_s7  ;;  %p629_p9 = scmp.lt.s32.totalorder %s864_s28, %s915_s2 }
 0x18c   : > { %p630_p11 = scmp.lt.s32.totalorder %s628_s17, %s624_s7 }
 0x18d   : > { %p626_p6 = pnand %p625_p7, %p811_p13 }
 0x18e   : > { %p631_p12 = por %p630_p11, %p629_p9 }
 0x18f   : > { %p627_p4 = pneg %p626_p6 }
 0x191   : > { %p632_p1 = pnand %p631_p12, %p627_p4 }
 0x193   : > { %635 = shalt.err (!%p632_p1)
}
 0x194   : > { %s706_s22 = smov 128   ;;  %s707_s23 = smov 256  }
 0x195   : > { %s708_s26 = smov 8  }
 0x196   : > { %479 = dma.vmem_to_hbm [thread:$0]  (%p811_p13), %s857_s24, 512, %s864_s28, %s326_s12, %s706_s22, %s707_s23, %s708_s26  }
 0x197 PF: > { %s354_s27 = sand.u32 1, %s674_s9   ;;  %p927_p8 = scmp.ne.s32.totalorder %s920_s20, 0 }
 0x198   : > { %p928_p10 = scmp.ge.s32.totalorder %s694_s14, 2  ;;  %s355_s18 = scalar_lea.sflag [#allocation5], %s354_s27 }
 0x19a   : > { %p490_p0 = pnand %p928_p10, %p927_p8 }
 0x19c   : > { %p491_p2 = pneg %p490_p0 }
 0x19e   : > { %669 = dma.done.wait (%p491_p2), %s355_s18, 512  }
 0x19f   : > { %671 = vsyncadd (%p491_p2), %s355_s18, 4294966784  ;;  %s19_s14 = sadd.s32 1, %s694_s14   ;;  %s929_s9 = smov %s678_s10 }
 0x1a0   : > { %p16_p3 = scmp.ge.s32.totalorder %s19_s14, 4   ;;  %s930_s10 = smov %s682_s11 }
 0x1a1   : > { %s931_s11 = smov %s820_s15  ;;  %s932_s12 = smov %s690_s13 }
 0x1a2   : > { %s933_s13 = smov %s935_s25  ;;  %18 = sbr.rel (!%p16_p3) target bundleno = 7 (0x7), region = 89 }
 0x1a7   :  { %360 = vsyncpa [#allocation4], 1 }
 0x1a8   :  { %362 = vsyncpa [#allocation4 + $0x1], 1 }
 0x1a9   :  { %363 = vsyncpa [#allocation7], 1 }
 0x1aa   :  { %364 = vsyncpa [#allocation5], 1 }
 0x1ab   :  { %366 = vsyncpa [#allocation5 + $0x1], 1 }

</bundles_post_ra>
